<compile_context>
chip_gen: v7x
topology: tpu7x:2x2x1
jax: 0.10.0
libtpu: 0.0.40
codegen_flags: <defaults>
</compile_context>

<pallas_src>
import functools

import jax
import jax.numpy as jnp
from jax.experimental import pallas as pl
from jax.experimental.pallas import tpu as pltpu

LANE = 128      # vreg lane width: feature dims padded to this
SUBLANE = 8     # vreg sublane width: node count padded to a multiple of this


def _round_up(n, m):
    return ((n + m - 1) // m) * m


def _pad_to(a, shape):
    """Zero-pad f32 array `a` into the top-left corner of `shape`."""
    a = jnp.asarray(a, jnp.float32)
    out = jnp.zeros(shape, jnp.float32)
    return out.at[tuple(slice(0, s) for s in a.shape)].set(a)


# ----------------------------------------------------------------------------
# Fused Pallas kernel: full GraphStateEncoder forward in one invocation.
# All operands are whole-array VMEM blocks (everything fits trivially).
# ----------------------------------------------------------------------------
def _fused_gnn_kernel(x_ref, adj_ref,
                      w_enc_ref, b_enc_ref,
                      w_msg_ref, b_msg_ref,
                      w_upd_h_ref, w_upd_a_ref, b_upd_ref,
                      w1_ref, b1_ref, w2_ref, b2_ref,
                      o_ref,
                      *, num_layers: int, num_nodes: int):
    f32 = jnp.float32
    x = x_ref[...]            # (Np, Fp)
    adj = adj_ref[...]        # (Np, Np) mean-normalized adjacency

    # Node encoder: ReLU(x @ W + b)
    h = jnp.maximum(
        jnp.dot(x, w_enc_ref[...], preferred_element_type=f32) + b_enc_ref[...],
        0.0)                                                        # (Np, Hp)

    # Message-passing layers, fully unrolled; h stays resident in VMEM/vregs.
    for l in range(num_layers):
        msgs = jnp.dot(h, w_msg_ref[l], preferred_element_type=f32) + b_msg_ref[l]
        agg = jnp.dot(adj, msgs, preferred_element_type=f32)        # mean over in-neighbors
        # ReLU([h, agg] @ W_upd + b) with W_upd split into two halves
        # (removes the concat and its extra kernel boundary).
        h = jnp.maximum(
            jnp.dot(h, w_upd_h_ref[l], preferred_element_type=f32)
            + jnp.dot(agg, w_upd_a_ref[l], preferred_element_type=f32)
            + b_upd_ref[l],
            0.0)

    # Global mean pooling over *real* nodes on the VPU/XLU (no 1-row matmul).
    row_ids = jax.lax.broadcasted_iota(jnp.int32, h.shape, 0)
    h_masked = jnp.where(row_ids < num_nodes, h, 0.0)
    g = jnp.sum(h_masked, axis=0, keepdims=True) * (1.0 / num_nodes)  # (1, Hp)

    # output_proj: Linear -> ReLU -> Linear
    z = jnp.maximum(
        jnp.dot(g, w1_ref[...], preferred_element_type=f32) + b1_ref[...], 0.0)
    o_ref[...] = (jnp.dot(z, w2_ref[...], preferred_element_type=f32)
                  + b2_ref[...]).astype(o_ref.dtype)


# ----------------------------------------------------------------------------
# Parameter construction (deterministic, matches torch.nn.Linear init)
# ----------------------------------------------------------------------------
def init_params(key, node_dim, hidden_dim, num_gnn_layers, output_dim):
    def dense(k, fan_in, fan_out):
        kw, kb = jax.random.split(k)
        lim = 1.0 / jnp.sqrt(fan_in)
        w = jax.random.uniform(kw, (fan_in, fan_out), jnp.float32, -lim, lim)
        b = jax.random.uniform(kb, (fan_out,), jnp.float32, -lim, lim)
        return w, b

    keys = jax.random.split(key, 2 + 2 * num_gnn_layers + 2)
    params = {"node_enc": dense(keys[0], node_dim, hidden_dim)}
    layers = []
    for l in range(num_gnn_layers):
        w_msg = dense(keys[1 + 2 * l], hidden_dim, hidden_dim)
        w_upd = dense(keys[2 + 2 * l], 2 * hidden_dim, hidden_dim)
        layers.append((w_msg, w_upd))
    params["gnn_layers"] = layers
    params["proj1"] = dense(keys[-2], hidden_dim, output_dim)
    params["proj2"] = dense(keys[-1], output_dim, output_dim)
    return params


def prepare_params(params, node_dim, hidden_dim, output_dim):
    """Pad + stack parameters ONCE so every kernel operand is lane-dense (128)."""
    fp = _round_up(node_dim, LANE)
    hp = _round_up(hidden_dim, LANE)
    op = _round_up(output_dim, LANE)

    w_enc, b_enc = params["node_enc"]
    packed = {
        "w_enc": _pad_to(w_enc, (fp, hp)),
        "b_enc": _pad_to(b_enc.reshape(1, -1), (1, hp)),
    }

    w_msg_l, b_msg_l, w_upd_h_l, w_upd_a_l, b_upd_l = [], [], [], [], []
    for (wm, bm), (wu, bu) in params["gnn_layers"]:
        w_msg_l.append(_pad_to(wm, (hp, hp)))
        b_msg_l.append(_pad_to(bm.reshape(1, -1), (1, hp)))
        # Split (2*hidden, hidden) update weight: top half multiplies h,
        # bottom half multiplies the aggregated messages (replaces concat).
        w_upd_h_l.append(_pad_to(wu[:hidden_dim], (hp, hp)))
        w_upd_a_l.append(_pad_to(wu[hidden_dim:], (hp, hp)))
        b_upd_l.append(_pad_to(bu.reshape(1, -1), (1, hp)))

    packed["w_msg"] = jnp.stack(w_msg_l)       # (L, Hp, Hp)
    packed["b_msg"] = jnp.stack(b_msg_l)       # (L, 1, Hp)
    packed["w_upd_h"] = jnp.stack(w_upd_h_l)   # (L, Hp, Hp)
    packed["w_upd_a"] = jnp.stack(w_upd_a_l)   # (L, Hp, Hp)
    packed["b_upd"] = jnp.stack(b_upd_l)       # (L, 1, Hp)

    w1, b1 = params["proj1"]
    w2, b2 = params["proj2"]
    packed["w1"] = _pad_to(w1, (hp, op))
    packed["b1"] = _pad_to(b1.reshape(1, -1), (1, op))
    packed["w2"] = _pad_to(w2, (op, op))
    packed["b2"] = _pad_to(b2.reshape(1, -1), (1, op))

    packed["dims"] = (node_dim, hidden_dim, output_dim, fp, hp, op)
    return packed


# ----------------------------------------------------------------------------
# GraphStateEncoder forward (one pallas_call)
# ----------------------------------------------------------------------------
def graph_state_encoder_forward(packed, node_features, edge_index, global_features=None):
    """node_features: (N, node_dim) f32; edge_index: (2, E) int32 [src; dst]."""
    node_dim, hidden_dim, output_dim, fp, hp, op = packed["dims"]
    num_nodes = node_features.shape[0]
    n_pad = _round_up(num_nodes, SUBLANE)

    if global_features is not None:
        # TODO(synk): global-feature concat changes output_proj's input width;
        # not representable with these fixed proj weights.
        raise NotImplementedError("global_features path not supported")

    # --- plain-JAX glue: dense mean-aggregation adjacency from edge_index ---
    # A[dst, src] = 1 / deg(dst); padded rows/cols stay zero so padded nodes
    # never contribute to real nodes.
    src, dst = edge_index[0], edge_index[1]
    adj = jnp.zeros((num_nodes, num_nodes), jnp.float32).at[dst, src].add(1.0)
    deg = jnp.maximum(adj.sum(axis=1, keepdims=True), 1.0)
    adj_p = _pad_to(adj / deg, (n_pad, n_pad))
    x_p = _pad_to(node_features, (n_pad, fp))

    num_layers = packed["w_msg"].shape[0]
    kernel = functools.partial(_fused_gnn_kernel,
                               num_layers=int(num_layers),
                               num_nodes=int(num_nodes))

    vmem = pl.BlockSpec(memory_space=pltpu.MemorySpace.VMEM)
    out = pl.pallas_call(
        kernel,
        out_shape=jax.ShapeDtypeStruct((1, op), jnp.float32),
        in_specs=[vmem] * 13,
        out_specs=vmem,
    )(x_p, adj_p,
      packed["w_enc"], packed["b_enc"],
      packed["w_msg"], packed["b_msg"],
      packed["w_upd_h"], packed["w_upd_a"], packed["b_upd"],
      packed["w1"], packed["b1"], packed["w2"], packed["b2"])

    # Matches torch: encoding.squeeze(0) when batch size is 1.
    return out[0, :output_dim]


# ----------------------------------------------------------------------------
# Demo
# ----------------------------------------------------------------------------
if __name__ == "__main__":
    node_dim = 16
    hidden_dim = 32
    num_gnn_layers = 3
    output_dim = 64
    num_nodes = 8
    num_edges = 16

    key = jax.random.PRNGKey(0)
    k_par, k_feat, k_edge = jax.random.split(key, 3)

    params = init_params(k_par, node_dim, hidden_dim, num_gnn_layers, output_dim)
    packed = prepare_params(params, node_dim, hidden_dim, output_dim)

    node_features = jax.random.normal(k_feat, (num_nodes, node_dim), jnp.float32)
    # Deterministic edge set: ring + random extra edges.
    ring_src = jnp.arange(num_nodes, dtype=jnp.int32)
    ring_dst = (ring_src + 1) % num_nodes
    extra = jax.random.randint(k_edge, (2, num_edges - num_nodes), 0, num_nodes, jnp.int32)
    edge_index = jnp.concatenate([jnp.stack([ring_src, ring_dst]), extra], axis=1)

    fwd = jax.jit(lambda nf, ei: graph_state_encoder_forward(packed, nf, ei))
    encoding = jax.block_until_ready(fwd(node_features, edge_index))

    assert encoding.shape == (output_dim,), encoding.shape
    assert bool(jnp.all(jnp.isfinite(encoding)))
    print("KERNEL_OK")
</pallas_src>

<mosaic_0001>
module attributes {stable_mosaic.version = 11 : i64} {
  func.func private @main(%arg0: i32) attributes {dimension_semantics = [#tpu.dimension_semantics<core_parallel>], iteration_bounds = array<i64: 2>, tpu.core_type = #tpu.core_type<sc_scalar_subcore>, window_params = []} {
    return
  }
}

module attributes {stable_mosaic.version = 11 : i64} {
  func.func private @main(%arg0: i32) attributes {dimension_semantics = [#tpu.dimension_semantics<core_parallel>], iteration_bounds = array<i64: 2>, tpu.core_type = #tpu.core_type<sc_scalar_subcore>, window_params = []} {
    return
  }
}

module attributes {stable_mosaic.version = 11 : i64} {
  func.func @_fused_gnn_kernel(%arg0: memref<8x128xf32, #tpu.memory_space<vmem>>, %arg1: memref<8x8xf32, #tpu.memory_space<vmem>>, %arg2: memref<128x128xf32, #tpu.memory_space<vmem>>, %arg3: memref<1x128xf32, #tpu.memory_space<vmem>>, %arg4: memref<3x128x128xf32, #tpu.memory_space<vmem>>, %arg5: memref<3x1x128xf32, #tpu.memory_space<vmem>>, %arg6: memref<3x128x128xf32, #tpu.memory_space<vmem>>, %arg7: memref<3x128x128xf32, #tpu.memory_space<vmem>>, %arg8: memref<3x1x128xf32, #tpu.memory_space<vmem>>, %arg9: memref<128x128xf32, #tpu.memory_space<vmem>>, %arg10: memref<1x128xf32, #tpu.memory_space<vmem>>, %arg11: memref<128x128xf32, #tpu.memory_space<vmem>>, %arg12: memref<1x128xf32, #tpu.memory_space<vmem>>, %arg13: memref<1x128xf32, #tpu.memory_space<vmem>>) attributes {dimension_semantics = [], scalar_prefetch = 0 : i64, scratch_operands = 0 : i64, tpu.core_type = #tpu.core_type<tc>} {
    %c0 = arith.constant 0 : index
    %c0_0 = arith.constant 0 : index
    %0 = vector.load %arg0[%c0, %c0_0] : memref<8x128xf32, #tpu.memory_space<vmem>>, vector<8x128xf32>
    %c0_1 = arith.constant 0 : index
    %c0_2 = arith.constant 0 : index
    %1 = vector.load %arg1[%c0_1, %c0_2] : memref<8x8xf32, #tpu.memory_space<vmem>>, vector<8x8xf32>
    %c0_3 = arith.constant 0 : index
    %c0_4 = arith.constant 0 : index
    %2 = vector.load %arg2[%c0_3, %c0_4] : memref<128x128xf32, #tpu.memory_space<vmem>>, vector<128x128xf32>
    %cst = arith.constant dense<0.000000e+00> : vector<8x128xf32>
    %3 = tpu.matmul %0, %2, %cst {dimension_numbers = #tpu.dot_dimension_numbers<[1], [0], [0], [1], [0, 0, 1, 1], [], []>} : vector<8x128xf32>, vector<128x128xf32>, vector<8x128xf32> -> vector<8x128xf32>
    %c0_5 = arith.constant 0 : index
    %c0_6 = arith.constant 0 : index
    %4 = vector.load %arg3[%c0_5, %c0_6] : memref<1x128xf32, #tpu.memory_space<vmem>>, vector<1x128xf32>
    %5 = vector.broadcast %4 : vector<1x128xf32> to vector<8x128xf32>
    %6 = arith.addf %3, %5 : vector<8x128xf32>
    %cst_7 = arith.constant 0.000000e+00 : f32
    %7 = vector.broadcast %cst_7 : f32 to vector<8x128xf32>
    %8 = arith.maximumf %6, %7 : vector<8x128xf32>
    %c0_8 = arith.constant 0 : index
    %c0_9 = arith.constant 0 : index
    %c0_10 = arith.constant 0 : index
    %9 = vector.load %arg4[%c0_8, %c0_9, %c0_10] : memref<3x128x128xf32, #tpu.memory_space<vmem>>, vector<1x128x128xf32>
    %10 = vector.shape_cast %9 : vector<1x128x128xf32> to vector<128x128xf32>
    %cst_11 = arith.constant dense<0.000000e+00> : vector<8x128xf32>
    %11 = tpu.matmul %8, %10, %cst_11 {dimension_numbers = #tpu.dot_dimension_numbers<[1], [0], [0], [1], [0, 0, 1, 1], [], []>} : vector<8x128xf32>, vector<128x128xf32>, vector<8x128xf32> -> vector<8x128xf32>
    %c0_12 = arith.constant 0 : index
    %c0_13 = arith.constant 0 : index
    %c0_14 = arith.constant 0 : index
    %12 = vector.load %arg5[%c0_12, %c0_13, %c0_14] : memref<3x1x128xf32, #tpu.memory_space<vmem>>, vector<1x1x128xf32>
    %13 = vector.shape_cast %12 : vector<1x1x128xf32> to vector<1x128xf32>
    %14 = vector.broadcast %13 : vector<1x128xf32> to vector<8x128xf32>
    %15 = arith.addf %11, %14 : vector<8x128xf32>
    %cst_15 = arith.constant dense<0.000000e+00> : vector<8x128xf32>
    %16 = tpu.matmul %1, %15, %cst_15 {dimension_numbers = #tpu.dot_dimension_numbers<[1], [0], [0], [1], [0, 0, 1, 1], [], []>} : vector<8x8xf32>, vector<8x128xf32>, vector<8x128xf32> -> vector<8x128xf32>
    %c0_16 = arith.constant 0 : index
    %c0_17 = arith.constant 0 : index
    %c0_18 = arith.constant 0 : index
    %17 = vector.load %arg6[%c0_16, %c0_17, %c0_18] : memref<3x128x128xf32, #tpu.memory_space<vmem>>, vector<1x128x128xf32>
    %18 = vector.shape_cast %17 : vector<1x128x128xf32> to vector<128x128xf32>
    %cst_19 = arith.constant dense<0.000000e+00> : vector<8x128xf32>
    %19 = tpu.matmul %8, %18, %cst_19 {dimension_numbers = #tpu.dot_dimension_numbers<[1], [0], [0], [1], [0, 0, 1, 1], [], []>} : vector<8x128xf32>, vector<128x128xf32>, vector<8x128xf32> -> vector<8x128xf32>
    %c0_20 = arith.constant 0 : index
    %c0_21 = arith.constant 0 : index
    %c0_22 = arith.constant 0 : index
    %20 = vector.load %arg7[%c0_20, %c0_21, %c0_22] : memref<3x128x128xf32, #tpu.memory_space<vmem>>, vector<1x128x128xf32>
    %21 = vector.shape_cast %20 : vector<1x128x128xf32> to vector<128x128xf32>
    %cst_23 = arith.constant dense<0.000000e+00> : vector<8x128xf32>
    %22 = tpu.matmul %16, %21, %cst_23 {dimension_numbers = #tpu.dot_dimension_numbers<[1], [0], [0], [1], [0, 0, 1, 1], [], []>} : vector<8x128xf32>, vector<128x128xf32>, vector<8x128xf32> -> vector<8x128xf32>
    %23 = arith.addf %19, %22 : vector<8x128xf32>
    %c0_24 = arith.constant 0 : index
    %c0_25 = arith.constant 0 : index
    %c0_26 = arith.constant 0 : index
    %24 = vector.load %arg8[%c0_24, %c0_25, %c0_26] : memref<3x1x128xf32, #tpu.memory_space<vmem>>, vector<1x1x128xf32>
    %25 = vector.shape_cast %24 : vector<1x1x128xf32> to vector<1x128xf32>
    %26 = vector.broadcast %25 : vector<1x128xf32> to vector<8x128xf32>
    %27 = arith.addf %23, %26 : vector<8x128xf32>
    %cst_27 = arith.constant 0.000000e+00 : f32
    %28 = vector.broadcast %cst_27 : f32 to vector<8x128xf32>
    %29 = arith.maximumf %27, %28 : vector<8x128xf32>
    %c1 = arith.constant 1 : index
    %c0_28 = arith.constant 0 : index
    %c0_29 = arith.constant 0 : index
    %30 = vector.load %arg4[%c1, %c0_28, %c0_29] : memref<3x128x128xf32, #tpu.memory_space<vmem>>, vector<1x128x128xf32>
    %31 = vector.shape_cast %30 : vector<1x128x128xf32> to vector<128x128xf32>
    %cst_30 = arith.constant dense<0.000000e+00> : vector<8x128xf32>
    %32 = tpu.matmul %29, %31, %cst_30 {dimension_numbers = #tpu.dot_dimension_numbers<[1], [0], [0], [1], [0, 0, 1, 1], [], []>} : vector<8x128xf32>, vector<128x128xf32>, vector<8x128xf32> -> vector<8x128xf32>
    %c1_31 = arith.constant 1 : index
    %c0_32 = arith.constant 0 : index
    %c0_33 = arith.constant 0 : index
    %33 = vector.load %arg5[%c1_31, %c0_32, %c0_33] : memref<3x1x128xf32, #tpu.memory_space<vmem>>, vector<1x1x128xf32>
    %34 = vector.shape_cast %33 : vector<1x1x128xf32> to vector<1x128xf32>
    %35 = vector.broadcast %34 : vector<1x128xf32> to vector<8x128xf32>
    %36 = arith.addf %32, %35 : vector<8x128xf32>
    %cst_34 = arith.constant dense<0.000000e+00> : vector<8x128xf32>
    %37 = tpu.matmul %1, %36, %cst_34 {dimension_numbers = #tpu.dot_dimension_numbers<[1], [0], [0], [1], [0, 0, 1, 1], [], []>} : vector<8x8xf32>, vector<8x128xf32>, vector<8x128xf32> -> vector<8x128xf32>
    %c1_35 = arith.constant 1 : index
    %c0_36 = arith.constant 0 : index
    %c0_37 = arith.constant 0 : index
    %38 = vector.load %arg6[%c1_35, %c0_36, %c0_37] : memref<3x128x128xf32, #tpu.memory_space<vmem>>, vector<1x128x128xf32>
    %39 = vector.shape_cast %38 : vector<1x128x128xf32> to vector<128x128xf32>
    %cst_38 = arith.constant dense<0.000000e+00> : vector<8x128xf32>
    %40 = tpu.matmul %29, %39, %cst_38 {dimension_numbers = #tpu.dot_dimension_numbers<[1], [0], [0], [1], [0, 0, 1, 1], [], []>} : vector<8x128xf32>, vector<128x128xf32>, vector<8x128xf32> -> vector<8x128xf32>
    %c1_39 = arith.constant 1 : index
    %c0_40 = arith.constant 0 : index
    %c0_41 = arith.constant 0 : index
    %41 = vector.load %arg7[%c1_39, %c0_40, %c0_41] : memref<3x128x128xf32, #tpu.memory_space<vmem>>, vector<1x128x128xf32>
    %42 = vector.shape_cast %41 : vector<1x128x128xf32> to vector<128x128xf32>
    %cst_42 = arith.constant dense<0.000000e+00> : vector<8x128xf32>
    %43 = tpu.matmul %37, %42, %cst_42 {dimension_numbers = #tpu.dot_dimension_numbers<[1], [0], [0], [1], [0, 0, 1, 1], [], []>} : vector<8x128xf32>, vector<128x128xf32>, vector<8x128xf32> -> vector<8x128xf32>
    %44 = arith.addf %40, %43 : vector<8x128xf32>
    %c1_43 = arith.constant 1 : index
    %c0_44 = arith.constant 0 : index
    %c0_45 = arith.constant 0 : index
    %45 = vector.load %arg8[%c1_43, %c0_44, %c0_45] : memref<3x1x128xf32, #tpu.memory_space<vmem>>, vector<1x1x128xf32>
    %46 = vector.shape_cast %45 : vector<1x1x128xf32> to vector<1x128xf32>
    %47 = vector.broadcast %46 : vector<1x128xf32> to vector<8x128xf32>
    %48 = arith.addf %44, %47 : vector<8x128xf32>
    %cst_46 = arith.constant 0.000000e+00 : f32
    %49 = vector.broadcast %cst_46 : f32 to vector<8x128xf32>
    %50 = arith.maximumf %48, %49 : vector<8x128xf32>
    %c2 = arith.constant 2 : index
    %c0_47 = arith.constant 0 : index
    %c0_48 = arith.constant 0 : index
    %51 = vector.load %arg4[%c2, %c0_47, %c0_48] : memref<3x128x128xf32, #tpu.memory_space<vmem>>, vector<1x128x128xf32>
    %52 = vector.shape_cast %51 : vector<1x128x128xf32> to vector<128x128xf32>
    %cst_49 = arith.constant dense<0.000000e+00> : vector<8x128xf32>
    %53 = tpu.matmul %50, %52, %cst_49 {dimension_numbers = #tpu.dot_dimension_numbers<[1], [0], [0], [1], [0, 0, 1, 1], [], []>} : vector<8x128xf32>, vector<128x128xf32>, vector<8x128xf32> -> vector<8x128xf32>
    %c2_50 = arith.constant 2 : index
    %c0_51 = arith.constant 0 : index
    %c0_52 = arith.constant 0 : index
    %54 = vector.load %arg5[%c2_50, %c0_51, %c0_52] : memref<3x1x128xf32, #tpu.memory_space<vmem>>, vector<1x1x128xf32>
    %55 = vector.shape_cast %54 : vector<1x1x128xf32> to vector<1x128xf32>
    %56 = vector.broadcast %55 : vector<1x128xf32> to vector<8x128xf32>
    %57 = arith.addf %53, %56 : vector<8x128xf32>
    %cst_53 = arith.constant dense<0.000000e+00> : vector<8x128xf32>
    %58 = tpu.matmul %1, %57, %cst_53 {dimension_numbers = #tpu.dot_dimension_numbers<[1], [0], [0], [1], [0, 0, 1, 1], [], []>} : vector<8x8xf32>, vector<8x128xf32>, vector<8x128xf32> -> vector<8x128xf32>
    %c2_54 = arith.constant 2 : index
    %c0_55 = arith.constant 0 : index
    %c0_56 = arith.constant 0 : index
    %59 = vector.load %arg6[%c2_54, %c0_55, %c0_56] : memref<3x128x128xf32, #tpu.memory_space<vmem>>, vector<1x128x128xf32>
    %60 = vector.shape_cast %59 : vector<1x128x128xf32> to vector<128x128xf32>
    %cst_57 = arith.constant dense<0.000000e+00> : vector<8x128xf32>
    %61 = tpu.matmul %50, %60, %cst_57 {dimension_numbers = #tpu.dot_dimension_numbers<[1], [0], [0], [1], [0, 0, 1, 1], [], []>} : vector<8x128xf32>, vector<128x128xf32>, vector<8x128xf32> -> vector<8x128xf32>
    %c2_58 = arith.constant 2 : index
    %c0_59 = arith.constant 0 : index
    %c0_60 = arith.constant 0 : index
    %62 = vector.load %arg7[%c2_58, %c0_59, %c0_60] : memref<3x128x128xf32, #tpu.memory_space<vmem>>, vector<1x128x128xf32>
    %63 = vector.shape_cast %62 : vector<1x128x128xf32> to vector<128x128xf32>
    %cst_61 = arith.constant dense<0.000000e+00> : vector<8x128xf32>
    %64 = tpu.matmul %58, %63, %cst_61 {dimension_numbers = #tpu.dot_dimension_numbers<[1], [0], [0], [1], [0, 0, 1, 1], [], []>} : vector<8x128xf32>, vector<128x128xf32>, vector<8x128xf32> -> vector<8x128xf32>
    %65 = arith.addf %61, %64 : vector<8x128xf32>
    %c2_62 = arith.constant 2 : index
    %c0_63 = arith.constant 0 : index
    %c0_64 = arith.constant 0 : index
    %66 = vector.load %arg8[%c2_62, %c0_63, %c0_64] : memref<3x1x128xf32, #tpu.memory_space<vmem>>, vector<1x1x128xf32>
    %67 = vector.shape_cast %66 : vector<1x1x128xf32> to vector<1x128xf32>
    %68 = vector.broadcast %67 : vector<1x128xf32> to vector<8x128xf32>
    %69 = arith.addf %65, %68 : vector<8x128xf32>
    %cst_65 = arith.constant 0.000000e+00 : f32
    %70 = vector.broadcast %cst_65 : f32 to vector<8x128xf32>
    %71 = arith.maximumf %69, %70 : vector<8x128xf32>
    %72 = tpu.iota {dimensions = array<i32: 0>} : vector<8x128xi32>
    %c8_i32 = arith.constant 8 : i32
    %73 = vector.broadcast %c8_i32 : i32 to vector<8x128xi32>
    %74 = arith.cmpi slt, %72, %73 : vector<8x128xi32>
    %cst_66 = arith.constant 0.000000e+00 : f32
    %75 = vector.broadcast %cst_66 : f32 to vector<8x128xf32>
    %76 = arith.select %74, %71, %75 : vector<8x128xi1>, vector<8x128xf32>
    %cst_67 = arith.constant dense<0.000000e+00> : vector<128xf32>
    %77 = vector.multi_reduction <add>, %76, %cst_67 [0] : vector<8x128xf32> to vector<128xf32>
    %78 = vector.shape_cast %77 : vector<128xf32> to vector<1x128xf32>
    %cst_68 = arith.constant 1.250000e-01 : f32
    %79 = vector.broadcast %cst_68 : f32 to vector<1x128xf32>
    %80 = arith.mulf %78, %79 : vector<1x128xf32>
    %c0_69 = arith.constant 0 : index
    %c0_70 = arith.constant 0 : index
    %81 = vector.load %arg9[%c0_69, %c0_70] : memref<128x128xf32, #tpu.memory_space<vmem>>, vector<128x128xf32>
    %cst_71 = arith.constant dense<0.000000e+00> : vector<1x128xf32>
    %82 = tpu.matmul %80, %81, %cst_71 {dimension_numbers = #tpu.dot_dimension_numbers<[1], [0], [0], [1], [0, 0, 1, 1], [], []>} : vector<1x128xf32>, vector<128x128xf32>, vector<1x128xf32> -> vector<1x128xf32>
    %c0_72 = arith.constant 0 : index
    %c0_73 = arith.constant 0 : index
    %83 = vector.load %arg10[%c0_72, %c0_73] : memref<1x128xf32, #tpu.memory_space<vmem>>, vector<1x128xf32>
    %84 = arith.addf %82, %83 : vector<1x128xf32>
    %cst_74 = arith.constant 0.000000e+00 : f32
    %85 = vector.broadcast %cst_74 : f32 to vector<1x128xf32>
    %86 = arith.maximumf %84, %85 : vector<1x128xf32>
    %c0_75 = arith.constant 0 : index
    %c0_76 = arith.constant 0 : index
    %87 = vector.load %arg11[%c0_75, %c0_76] : memref<128x128xf32, #tpu.memory_space<vmem>>, vector<128x128xf32>
    %cst_77 = arith.constant dense<0.000000e+00> : vector<1x128xf32>
    %88 = tpu.matmul %86, %87, %cst_77 {dimension_numbers = #tpu.dot_dimension_numbers<[1], [0], [0], [1], [0, 0, 1, 1], [], []>} : vector<1x128xf32>, vector<128x128xf32>, vector<1x128xf32> -> vector<1x128xf32>
    %c0_78 = arith.constant 0 : index
    %c0_79 = arith.constant 0 : index
    %89 = vector.load %arg12[%c0_78, %c0_79] : memref<1x128xf32, #tpu.memory_space<vmem>>, vector<1x128xf32>
    %90 = arith.addf %88, %89 : vector<1x128xf32>
    %c0_80 = arith.constant 0 : index
    %c0_81 = arith.constant 0 : index
    %91 = vector.load %arg13[%c0_80, %c0_81] : memref<1x128xf32, #tpu.memory_space<vmem>>, vector<1x128xf32>
    tpu.vector_store %arg13[%c0_80, %c0_81], %90 {strides = array<i32>} : memref<1x128xf32, #tpu.memory_space<vmem>>, vector<1x128xf32>,
    return
  }
}

</mosaic_0001>

<bundles_post_ra>
// kernel: _lambda_.1
= control target key start
LH: loop header
LB: loop body
LE: loop exit
PB: predicated region body
PF: predicated region fallthrough
CT: control target
= control target key end

     0   :  { %v2423_v0 = vmov 0.0|0.0   ;;  %vm2424_vm0 = vmmov 0   ;;  %v2425_v4 = vmov 0.0   ;;  %vm233_vm1 = vcmask 64512   ;;  %s3255_s2 = inlined_call_operand.vmem [shape: f32[128,128], index: 2, kind: input, shape index: {}]   ;;  %s3256_s4 = inlined_call_operand.vmem [shape: f32[3,128,128], index: 4, kind: input, shape index: {}]   ;;  %s3257_s0 = inlined_call_operand.vmem [shape: f32[8,128], index: 0, kind: input, shape index: {}]   ;;  %s3258_s3 = inlined_call_operand.vmem [shape: f32[1,128], index: 3, kind: input, shape index: {}]   ;;  %s3259_s7 = inlined_call_operand.vmem [shape: f32[3,128,128], index: 7, kind: input, shape index: {}]   ;;  %s3260_s5 = inlined_call_operand.vmem [shape: f32[3,1,128], index: 5, kind: input, shape index: {}]   ;;  %s3261_s6 = inlined_call_operand.vmem [shape: f32[3,128,128], index: 6, kind: input, shape index: {}]   ;;  %s3262_s1 = inlined_call_operand.vmem [shape: f32[8,8], index: 1, kind: input, shape index: {}]   ;;  %s3263_s8 = inlined_call_operand.vmem [shape: f32[3,1,128], index: 8, kind: input, shape index: {}]   ;;  %s3264_s9 = inlined_call_operand.vmem [shape: f32[128,128], index: 9, kind: input, shape index: {}]   ;;  %s3265_s11 = inlined_call_operand.vmem [shape: f32[128,128], index: 11, kind: input, shape index: {}]   ;;  %s3266_s10 = inlined_call_operand.vmem [shape: f32[1,128], index: 10, kind: input, shape index: {}]   ;;  %s3267_s12 = inlined_call_operand.vmem [shape: f32[1,128], index: 12, kind: input, shape index: {}]   ;;  %s3268_s13 = inlined_call_operand.vmem [shape: f32[1,128], index: 13, kind: output, shape index: {}]  }
   0x1   :  { %2132 = vmatprep.subr.bf16.mxu0 %v2423_v0  ;;  %v46_v1 = vld [vmem:[%s3255_s2] sm:$0xff]  ;;  %v47_v2 = vld [vmem:[%s3255_s2 + $0x8] sm:$0xff]  ;;  %v48_v3 = vld [vmem:[%s3255_s2 + $0x10] sm:$0xff]  ;;  %1729 = vmatprep.mubr.msk.f32.mxu0 %vm2424_vm0, %v2425_v4 }
   0x2   :  { %v2133_v5 = vpack.c.bf16 %v47_v2, %v46_v1  ;;  %v49_v6 = vld [vmem:[%s3255_s2 + $0x18] sm:$0xff]  ;;  %2156 = vmatprep.subr.bf16.mxu1 %v2423_v0  ;;  %1764 = vmatprep.mubr.msk.f32.mxu1 %vm2424_vm0, %v2425_v4  ;;  %v50_v8 = vld [vmem:[%s3255_s2 + $0x20] sm:$0xff]  ;;  %v51_v9 = vld [vmem:[%s3255_s2 + $0x28] sm:$0xff] }
   0x3   :  { %v2136_v7 = vpack.c.bf16 %v49_v6, %v48_v3  ;;  %v140_v10 = vld [vmem:[%s3256_s4] sm:$0xff]  ;;  %v141_v11 = vld [vmem:[%s3256_s4 + $0x8] sm:$0xff]  ;;  %v142_v12 = vld [vmem:[%s3256_s4 + $0x10] sm:$0xff]  ;;  %v2139_v14 = vpack.c.bf16 %v51_v9, %v50_v8 }
   0x4   :  { %2134 = vmatpush3.bf16.msra.mxu0 %v2133_v5  ;;  %v143_v13 = vld [vmem:[%s3256_s4 + $0x18] sm:$0xff]  ;;  %v2157_v15 = vpack.c.bf16 %v141_v11, %v140_v10  ;;  %v52_v16 = vld [vmem:[%s3255_s2 + $0x30] sm:$0xff]  ;;  %v144_v19 = vld [vmem:[%s3256_s4 + $0x20] sm:$0xff] }
   0x5   :  { %2135 = vmatprep.subr.bf16.mxu0 %v2423_v0  ;;  %v53_v17 = vld [vmem:[%s3255_s2 + $0x38] sm:$0xff]  ;;  %v2160_v18 = vpack.c.bf16 %v143_v13, %v142_v12  ;;  %v145_v20 = vld [vmem:[%s3256_s4 + $0x28] sm:$0xff]  ;;  %v54_v22 = vld [vmem:[%s3255_s2 + $0x40] sm:$0xff] }
   0x6   :  { %2158 = vmatpush3.bf16.msra.mxu1 %v2157_v15  ;;  %v2142_v21 = vpack.c.bf16 %v53_v17, %v52_v16  ;;  %v55_v23 = vld [vmem:[%s3255_s2 + $0x48] sm:$0xff]  ;;  %v2163_v24 = vpack.c.bf16 %v145_v20, %v144_v19  ;;  %v146_v25 = vld [vmem:[%s3256_s4 + $0x30] sm:$0xff]  ;;  %v147_v26 = vld [vmem:[%s3256_s4 + $0x38] sm:$0xff] }
   0x7   :  { %2159 = vmatprep.subr.bf16.mxu1 %v2423_v0  ;;  %v2145_v27 = vpack.c.bf16 %v55_v23, %v54_v22  ;;  %v56_v28 = vld [vmem:[%s3255_s2 + $0x50] sm:$0xff]  ;;  %v57_v29 = vld [vmem:[%s3255_s2 + $0x58] sm:$0xff]  ;;  %v2166_v30 = vpack.c.bf16 %v147_v26, %v146_v25  ;;  %v148_v31 = vld [vmem:[%s3256_s4 + $0x40] sm:$0xff] }
   0x8   :  { %2137 = vmatpush3.bf16.msra.mxu0 %v2136_v7  ;;  %v149_v32 = vld [vmem:[%s3256_s4 + $0x48] sm:$0xff]  ;;  %v2148_v33 = vpack.c.bf16 %v57_v29, %v56_v28  ;;  %v58_v34 = vld [vmem:[%s3255_s2 + $0x60] sm:$0xff]  ;;  %v150_v37 = vld [vmem:[%s3256_s4 + $0x50] sm:$0xff] }
   0x9   :  { %2138 = vmatprep.subr.bf16.mxu0 %v2423_v0  ;;  %v59_v35 = vld [vmem:[%s3255_s2 + $0x68] sm:$0xff]  ;;  %v2169_v36 = vpack.c.bf16 %v149_v32, %v148_v31  ;;  %v151_v38 = vld [vmem:[%s3256_s4 + $0x58] sm:$0xff]  ;;  %v60_v40 = vld [vmem:[%s3255_s2 + $0x70] sm:$0xff] }
   0xa   :  { %2161 = vmatpush3.bf16.msra.mxu1 %v2160_v18  ;;  %v2151_v39 = vpack.c.bf16 %v59_v35, %v58_v34  ;;  %v61_v41 = vld [vmem:[%s3255_s2 + $0x78] sm:$0xff]  ;;  %v2172_v42 = vpack.c.bf16 %v151_v38, %v150_v37  ;;  %v152_v43 = vld [vmem:[%s3256_s4 + $0x60] sm:$0xff]  ;;  %v153_v44 = vld [vmem:[%s3256_s4 + $0x68] sm:$0xff] }
   0xb   :  { %2162 = vmatprep.subr.bf16.mxu1 %v2423_v0  ;;  %v2154_v45 = vpack.c.bf16 %v61_v41, %v60_v40  ;;  %v2175_v46 = vpack.c.bf16 %v153_v44, %v152_v43  ;;  %v44_v47 = vld [vmem:[%s3257_s0] sm:$0xff]  ;;  %v154_v48 = vld [vmem:[%s3256_s4 + $0x70] sm:$0xff]  ;;  %v155_v49 = vld [vmem:[%s3256_s4 + $0x78] sm:$0xff] }
   0xc   :  { %2140 = vmatpush3.bf16.msra.mxu0 %v2139_v14  ;;  %v2178_v50 = vpack.c.bf16 %v155_v49, %v154_v48  ;;  %v1377_v51 = vld [vmem:[%s3258_s3] ss:$0 sm:$0xff]  ;;  %v324_v57 = vld [vmem:[%s3259_s7 + $0x8] sm:$0xff]  ;;  %v325_v58 = vld [vmem:[%s3259_s7 + $0x10] sm:$0xff] }
   0xd   :  { %2141 = vmatprep.subr.bf16.mxu0 %v2423_v0  ;;  %v323_v56 = vld [vmem:[%s3259_s7] sm:$0xff]  ;;  %v326_v60 = vld [vmem:[%s3259_s7 + $0x18] sm:$0xff]  ;;  %v328_v63 = vld [vmem:[%s3259_s7 + $0x28] sm:$0xff] }
   0xe   :  { %2164 = vmatpush3.bf16.msra.mxu1 %v2163_v24  ;;  %v2181_v59 = vpack.c.bf16 %v324_v57, %v323_v56  ;;  %v2184_v61 = vpack.c.bf16 %v326_v60, %v325_v58  ;;  %v327_v62 = vld [vmem:[%s3259_s7 + $0x20] sm:$0xff]  ;;  %v329_v2 = vld [vmem:[%s3259_s7 + $0x30] sm:$0xff]  ;;  %v330_v3 = vld [vmem:[%s3259_s7 + $0x38] sm:$0xff] }
   0xf   :  { %2165 = vmatprep.subr.bf16.mxu1 %v2423_v0  ;;  %v2187_v1 = vpack.c.bf16 %v328_v63, %v327_v62  ;;  %v2190_v5 = vpack.c.bf16 %v330_v3, %v329_v2  ;;  %v331_v6 = vld [vmem:[%s3259_s7 + $0x40] sm:$0xff]  ;;  %v332_v7 = vld [vmem:[%s3259_s7 + $0x48] sm:$0xff]  ;;  %v333_v9 = vld [vmem:[%s3259_s7 + $0x50] sm:$0xff] }
  0x10   :  { %2143 = vmatpush3.bf16.msra.mxu0 %v2142_v21  ;;  %v2193_v8 = vpack.c.bf16 %v332_v7, %v331_v6  ;;  %v334_v10 = vld [vmem:[%s3259_s7 + $0x58] sm:$0xff]  ;;  %v335_v12 = vld [vmem:[%s3259_s7 + $0x60] sm:$0xff]  ;;  %v336_v13 = vld [vmem:[%s3259_s7 + $0x68] sm:$0xff] }
  0x11   :  { %2144 = vmatprep.subr.bf16.mxu0 %v2423_v0  ;;  %v2196_v11 = vpack.c.bf16 %v334_v10, %v333_v9  ;;  %v2199_v14 = vpack.c.bf16 %v336_v13, %v335_v12  ;;  %v337_v15 = vld [vmem:[%s3259_s7 + $0x70] sm:$0xff]  ;;  %v338_v16 = vld [vmem:[%s3259_s7 + $0x78] sm:$0xff]  ;;  %v1378_v18 = vld [vmem:[%s3260_s5] ss:$0 sm:$0xff] }
  0x12   :  { %2167 = vmatpush3.bf16.msra.mxu1 %v2166_v30  ;;  %v2202_v17 = vpack.c.bf16 %v338_v16, %v337_v15  ;;  %v307_v19 = vld [vmem:[%s3261_s6] sm:$0xff]  ;;  %v308_v20 = vld [vmem:[%s3261_s6 + $0x8] sm:$0xff]  ;;  %v309_v26 = vld [vmem:[%s3261_s6 + $0x10] sm:$0xff] }
  0x13   :  { %2168 = vmatprep.subr.bf16.mxu1 %v2423_v0  ;;  %v2697_v24 = vld [vmem:[%s3262_s1] sm:$0xff]  ;;  %v2205_v25 = vpack.c.bf16 %v308_v20, %v307_v19  ;;  %v312_v30 = vld [vmem:[%s3261_s6 + $0x28] sm:$0xff]  ;;  %v313_v32 = vld [vmem:[%s3261_s6 + $0x30] sm:$0xff] }
  0x14   :  { %2146 = vmatpush3.bf16.msra.mxu0 %v2145_v27  ;;  %v310_v27 = vld [vmem:[%s3261_s6 + $0x18] sm:$0xff]  ;;  %v311_v29 = vld [vmem:[%s3261_s6 + $0x20] sm:$0xff]  ;;  %v317_v38 = vld [vmem:[%s3261_s6 + $0x50] sm:$0xff] }
  0x15   :  { %2147 = vmatprep.subr.bf16.mxu0 %v2423_v0  ;;  %v2208_v28 = vpack.c.bf16 %v310_v27, %v309_v26  ;;  %v2211_v31 = vpack.c.bf16 %v312_v30, %v311_v29  ;;  %v315_v35 = vld [vmem:[%s3261_s6 + $0x40] sm:$0xff]  ;;  %v321_v44 = vld [vmem:[%s3261_s6 + $0x70] sm:$0xff]  ;;  %v1382_v48 = vld [vmem:[%s3256_s4 + $0x88] sm:$0xff] }
  0x16   :  { %2170 = vmatpush3.bf16.msra.mxu1 %v2169_v36  ;;  %v316_v36 = vld [vmem:[%s3261_s6 + $0x48] sm:$0xff]  ;;  %v319_v41 = vld [vmem:[%s3261_s6 + $0x60] sm:$0xff]  ;;  %v1387_v58 = vld [vmem:[%s3256_s4 + $0xb0] sm:$0xff] }
  0x17   :  { %2171 = vmatprep.subr.bf16.mxu1 %v2423_v0  ;;  %v2217_v37 = vpack.c.bf16 %v316_v36, %v315_v35  ;;  %v1386_v56 = vld [vmem:[%s3256_s4 + $0xa8] sm:$0xff]  ;;  %v1392_v2 = vld [vmem:[%s3256_s4 + $0xd8] sm:$0xff]  ;;  %v1395_v10 = vld [vmem:[%s3256_s4 + $0xf0] sm:$0xff] }
  0x18   :  { %2149 = vmatpush3.bf16.msra.mxu0 %v2148_v33  ;;  %v314_v33 = vld [vmem:[%s3261_s6 + $0x38] sm:$0xff]  ;;  %v1390_v62 = vld [vmem:[%s3256_s4 + $0xc8] sm:$0xff]  ;;  %v1404_v26 = vld [vmem:[%s3261_s6 + $0xa0] sm:$0xff] }
  0x19   :  { %2150 = vmatprep.subr.bf16.mxu0 %v2423_v0  ;;  %v2214_v34 = vpack.c.bf16 %v314_v33, %v313_v32  ;;  %v1394_v6 = vld [vmem:[%s3256_s4 + $0xe8] sm:$0xff]  ;;  %v1406_v29 = vld [vmem:[%s3261_s6 + $0xb0] sm:$0xff]  ;;  %v1407_v30 = vld [vmem:[%s3261_s6 + $0xb8] sm:$0xff] }
  0x1a   :  { %2173 = vmatpush3.bf16.msra.mxu1 %v2172_v42  ;;  %v320_v42 = vld [vmem:[%s3261_s6 + $0x68] sm:$0xff]  ;;  %v1408_v32 = vld [vmem:[%s3261_s6 + $0xc0] sm:$0xff]  ;;  %v1410_v35 = vld [vmem:[%s3261_s6 + $0xd0] sm:$0xff] }
  0x1b   :  { %2174 = vmatprep.subr.bf16.mxu1 %v2423_v0  ;;  %v2223_v43 = vpack.c.bf16 %v320_v42, %v319_v41  ;;  %v1405_v27 = vld [vmem:[%s3261_s6 + $0xa8] sm:$0xff]  ;;  %v1411_v36 = vld [vmem:[%s3261_s6 + $0xd8] sm:$0xff]  ;;  %v1414_v41 = vld [vmem:[%s3261_s6 + $0xf0] sm:$0xff] }
  0x1c   :  { %2152 = vmatpush3.bf16.msra.mxu0 %v2151_v39  ;;  %v318_v39 = vld [vmem:[%s3261_s6 + $0x58] sm:$0xff]  ;;  %v1409_v33 = vld [vmem:[%s3261_s6 + $0xc8] sm:$0xff] }
  0x1d   :  { %2153 = vmatprep.subr.bf16.mxu0 %v2423_v0  ;;  %v2220_v40 = vpack.c.bf16 %v318_v39, %v317_v38  ;;  %v1412_v38 = vld [vmem:[%s3261_s6 + $0xe0] sm:$0xff]  ;;  %v1413_v39 = vld [vmem:[%s3261_s6 + $0xe8] sm:$0xff]  ;;  %v1415_v42 = vld [vmem:[%s3261_s6 + $0xf8] sm:$0xff] }
  0x1e   :  { %2176 = vmatpush3.bf16.msra.mxu1 %v2175_v46 }
  0x1f   :  { %2177 = vmatprep.subr.bf16.mxu1 %v2423_v0 }
  0x20   :  { %2155 = vmatpush3.bf16.msra.mxu0 %v2154_v45  ;;  %v322_v45 = vld [vmem:[%s3261_s6 + $0x78] sm:$0xff] }
  0x21   :  { %1767 = vmatprep.subr.mxu0 %v2425_v4  ;;  %v2226_v46 = vpack.c.bf16 %v322_v45, %v321_v44  ;;  %v1398_v44 = vld [vmem:[%s3260_s5 + $0x1] ss:$0 sm:$0xff] }
  0x22   :  { %2179 = vmatpush3.bf16.msra.mxu1 %v2178_v50  ;;  %v1383_v50 = vld [vmem:[%s3256_s4 + $0x90] sm:$0xff]  ;;  %v1416_v45 = vld [vmem:[%s3259_s7 + $0x80] sm:$0xff] }
  0x23   :  { %1730 = vmatmul.mubr.f32.vlgmr.msra.gmra.mrb[0].mxu0 %v44_v47  ;;  %2180 = vmatprep.subr.bf16.mxu1 %v2423_v0  ;;  %v1381_v47 = vld [vmem:[%s3256_s4 + $0x80] sm:$0xff] }
  0x24   :  { %1769 = vmatprep.mubr.msk.f32.mxu0 %vm2424_vm0, %v2425_v4  ;;  %v2229_v49 = vpack.c.bf16 %v1382_v48, %v1381_v47 }
  0xf6   :  { %v135_v52 = vpop.f32.mrb[0].mxu0 }
  0xf7   :  { %v2622_v53 = vadd.f32 %v1377_v51, %v135_v52  ;;  %v1731_v54 = vpop.f32.mrb[1].mxu0  ;;  %v1384_v51 = vld [vmem:[%s3256_s4 + $0x98] sm:$0xff] }
  0xf8   :  { %v2232_v54 = vpack.c.bf16 %v1384_v51, %v1383_v50  ;;  %v1418_v51 = vld [vmem:[%s3259_s7 + $0x90] sm:$0xff] }
  0xf9   :  { %v139_v55 = vmax.f32 %v2622_v53, 0.0 }
  0xfb   :  { %1765 = vmatmul.mubr.f32.vlgmr.msra.gmra.mrb[0].mxu1 %v139_v55 }
  0xfc   :  { %1804 = vmatprep.mubr.msk.f32.mxu1 %vm2424_vm0, %v2425_v4  ;;  %2182 = vmatpush3.bf16.msra.mxu1 %v2181_v59  ;;  %v1388_v59 = vld [vmem:[%s3256_s4 + $0xb8] sm:$0xff] }
  0xfd   :  { %2183 = vmatprep.subr.bf16.mxu1 %v2423_v0  ;;  %v2238_v60 = vpack.c.bf16 %v1388_v59, %v1387_v58  ;;  %v1423_v58 = vld [vmem:[%s3259_s7 + $0xb8] sm:$0xff] }
 0x100   :  { %2185 = vmatpush3.bf16.msra.mxu1 %v2184_v61  ;;  %v1389_v61 = vld [vmem:[%s3256_s4 + $0xc0] sm:$0xff] }
 0x101   :  { %2186 = vmatprep.subr.bf16.mxu1 %v2423_v0  ;;  %v2241_v63 = vpack.c.bf16 %v1390_v62, %v1389_v61  ;;  %v1425_v61 = vld [vmem:[%s3259_s7 + $0xc8] sm:$0xff] }
 0x104   :  { %2188 = vmatpush3.bf16.msra.mxu1 %v2187_v1  ;;  %v1391_v1 = vld [vmem:[%s3256_s4 + $0xd0] sm:$0xff] }
 0x105   :  { %2189 = vmatprep.subr.bf16.mxu1 %v2423_v0  ;;  %v2244_v3 = vpack.c.bf16 %v1392_v2, %v1391_v1  ;;  %v1427_v1 = vld [vmem:[%s3259_s7 + $0xd8] sm:$0xff] }
 0x108   :  { %2191 = vmatpush3.bf16.msra.mxu1 %v2190_v5  ;;  %v1393_v5 = vld [vmem:[%s3256_s4 + $0xe0] sm:$0xff] }
 0x109   :  { %2192 = vmatprep.subr.bf16.mxu1 %v2423_v0  ;;  %v2247_v7 = vpack.c.bf16 %v1394_v6, %v1393_v5  ;;  %v1429_v5 = vld [vmem:[%s3259_s7 + $0xe8] sm:$0xff] }
 0x10c   :  { %2194 = vmatpush3.bf16.msra.mxu1 %v2193_v8 }
 0x10d   :  { %2195 = vmatprep.subr.bf16.mxu1 %v2423_v0 }
 0x110   :  { %2197 = vmatpush3.bf16.msra.mxu1 %v2196_v11  ;;  %v1396_v11 = vld [vmem:[%s3256_s4 + $0xf8] sm:$0xff] }
 0x111   :  { %2198 = vmatprep.subr.bf16.mxu1 %v2423_v0  ;;  %v2250_v12 = vpack.c.bf16 %v1396_v11, %v1395_v10 }
 0x114   :  { %2200 = vmatpush3.bf16.msra.mxu1 %v2199_v14  ;;  %v1380_v14 = vld [vmem:[%s3263_s8] ss:$0 sm:$0xff] }
 0x115   :  { %2201 = vmatprep.subr.bf16.mxu1 %v2423_v0 }
 0x118   :  { %2203 = vmatpush3.bf16.msra.mxu1 %v2202_v17  ;;  %v1400_v17 = vld [vmem:[%s3261_s6 + $0x80] sm:$0xff] }
 0x119   :  { %2228 = vmatprep.subr.bf16.mxu1 %v2423_v0 }
 0x1ce   :  { %v229_v21 = vpop.f32.mrb[0].mxu1 }
 0x1cf   :  { %v230_v22 = vadd.f32 %v1378_v18, %v229_v21  ;;  %v1766_v23 = vpop.f32.mrb[1].mxu1  ;;  %v1401_v18 = vld [vmem:[%s3261_s6 + $0x88] sm:$0xff] }
 0x1d0   :  { %v2277_v20 = vpack.c.bf16 %v1401_v18, %v1400_v17  ;;  %v1403_v23 = vld [vmem:[%s3261_s6 + $0x98] sm:$0xff] }
 0x1d1   :  { %1768 = vmatpush3.msra.mxu0 %v230_v22  ;;  %v1402_v22 = vld [vmem:[%s3261_s6 + $0x90] sm:$0xff] }
 0x1d2   :  { %1770 = vmatmul.mubr.msk.f32.vlgmr.msra.gmra.mrb[2].mxu0 %vm233_vm1, %v2697_v24  ;;  %2204 = vmatprep.subr.bf16.mxu0 %v2423_v0 }
 0x1d3   :  { %2206 = vmatpush3.bf16.msra.mxu0 %v2205_v25  ;;  %1839 = vmatprep.mubr.msk.f32.mxu0 %vm2424_vm0, %v2425_v4  ;;  %v2280_v25 = vpack.c.bf16 %v1403_v23, %v1402_v22  ;;  %v1440_v23 = vld [vmem:[%s3256_s4 + $0x130] sm:$0xff] }
 0x1d4   :  { %2207 = vmatprep.subr.bf16.mxu0 %v2423_v0 }
 0x1d7   :  { %2209 = vmatpush3.bf16.msra.mxu0 %v2208_v28  ;;  %v2283_v28 = vpack.c.bf16 %v1405_v27, %v1404_v26  ;;  %v1442_v27 = vld [vmem:[%s3256_s4 + $0x140] sm:$0xff] }
 0x1d8   :  { %2210 = vmatprep.subr.bf16.mxu0 %v2423_v0 }
 0x1db   :  { %2212 = vmatpush3.bf16.msra.mxu0 %v2211_v31  ;;  %v2286_v31 = vpack.c.bf16 %v1407_v30, %v1406_v29  ;;  %v1444_v30 = vld [vmem:[%s3256_s4 + $0x150] sm:$0xff] }
 0x1dc   :  { %2213 = vmatprep.subr.bf16.mxu0 %v2423_v0 }
 0x1df   :  { %2215 = vmatpush3.bf16.msra.mxu0 %v2214_v34  ;;  %v2289_v34 = vpack.c.bf16 %v1409_v33, %v1408_v32  ;;  %v1446_v33 = vld [vmem:[%s3256_s4 + $0x160] sm:$0xff] }
 0x1e0   :  { %2216 = vmatprep.subr.bf16.mxu0 %v2423_v0 }
 0x1e3   :  { %2218 = vmatpush3.bf16.msra.mxu0 %v2217_v37  ;;  %v2292_v37 = vpack.c.bf16 %v1411_v36, %v1410_v35  ;;  %v1448_v36 = vld [vmem:[%s3256_s4 + $0x170] sm:$0xff] }
 0x1e4   :  { %2219 = vmatprep.subr.bf16.mxu0 %v2423_v0 }
 0x1e7   :  { %2221 = vmatpush3.bf16.msra.mxu0 %v2220_v40  ;;  %v2295_v40 = vpack.c.bf16 %v1413_v39, %v1412_v38 }
 0x1e8   :  { %2222 = vmatprep.subr.bf16.mxu0 %v2423_v0 }
 0x1eb   :  { %2224 = vmatpush3.bf16.msra.mxu0 %v2223_v43  ;;  %v2298_v43 = vpack.c.bf16 %v1415_v42, %v1414_v41 }
 0x1ec   :  { %2225 = vmatprep.subr.bf16.mxu0 %v2423_v0 }
 0x1ef   :  { %2227 = vmatpush3.bf16.msra.mxu0 %v2226_v46  ;;  %v1417_v46 = vld [vmem:[%s3259_s7 + $0x88] sm:$0xff] }
 0x1f0   :  { %1877 = vmatprep.subr.mxu0 %v2425_v4  ;;  %v2253_v50 = vpack.c.bf16 %v1417_v46, %v1416_v45 }
 0x1f2   :  { %1840 = vmatmul.mubr.f32.vlgmr.msra.gmra.mrb[4].mxu0 %v139_v55  ;;  %v1385_v55 = vld [vmem:[%s3256_s4 + $0xa0] sm:$0xff] }
 0x1f3   :  { %1879 = vmatprep.mubr.msk.f32.mxu0 %vm2424_vm0, %v2425_v4  ;;  %v2235_v57 = vpack.c.bf16 %v1386_v56, %v1385_v55  ;;  %v1421_v55 = vld [vmem:[%s3259_s7 + $0xa8] sm:$0xff] }
 0x2a5   :  { %v303_v52 = vpop.f32.mrb[2].mxu0 }
 0x2a6   :  { %v1771_v53 = vpop.f32.mrb[3].mxu0  ;;  %1805 = vmatmul.mubr.f32.vlgmr.msra.gmra.mrb[2].mxu1 %v303_v52  ;;  %v1419_v52 = vld [vmem:[%s3259_s7 + $0x98] sm:$0xff] }
 0x2a7   :  { %2230 = vmatpush3.bf16.msra.mxu1 %v2229_v49  ;;  %1874 = vmatprep.mubr.msk.f32.mxu1 %vm2424_vm0, %v2425_v4  ;;  %v2256_v53 = vpack.c.bf16 %v1419_v52, %v1418_v51  ;;  %v1457_v51 = vld [vmem:[%s3261_s6 + $0x120] sm:$0xff]  ;;  %v1458_v52 = vld [vmem:[%s3261_s6 + $0x128] sm:$0xff] }
 0x2a8   :  { %2231 = vmatprep.subr.bf16.mxu1 %v2423_v0 }
 0x2ab   :  { %2233 = vmatpush3.bf16.msra.mxu1 %v2232_v54  ;;  %v1420_v54 = vld [vmem:[%s3259_s7 + $0xa0] sm:$0xff] }
 0x2ac   :  { %2234 = vmatprep.subr.bf16.mxu1 %v2423_v0  ;;  %v2259_v56 = vpack.c.bf16 %v1421_v55, %v1420_v54  ;;  %v1459_v54 = vld [vmem:[%s3261_s6 + $0x130] sm:$0xff]  ;;  %v1460_v55 = vld [vmem:[%s3261_s6 + $0x138] sm:$0xff] }
 0x2af   :  { %2236 = vmatpush3.bf16.msra.mxu1 %v2235_v57  ;;  %v1422_v57 = vld [vmem:[%s3259_s7 + $0xb0] sm:$0xff] }
 0x2b0   :  { %2237 = vmatprep.subr.bf16.mxu1 %v2423_v0  ;;  %v2262_v59 = vpack.c.bf16 %v1423_v58, %v1422_v57  ;;  %v1461_v57 = vld [vmem:[%s3261_s6 + $0x140] sm:$0xff]  ;;  %v1462_v58 = vld [vmem:[%s3261_s6 + $0x148] sm:$0xff] }
 0x2b3   :  { %2239 = vmatpush3.bf16.msra.mxu1 %v2238_v60  ;;  %v1424_v60 = vld [vmem:[%s3259_s7 + $0xc0] sm:$0xff] }
 0x2b4   :  { %2240 = vmatprep.subr.bf16.mxu1 %v2423_v0  ;;  %v2265_v62 = vpack.c.bf16 %v1425_v61, %v1424_v60  ;;  %v1463_v60 = vld [vmem:[%s3261_s6 + $0x150] sm:$0xff]  ;;  %v1464_v61 = vld [vmem:[%s3261_s6 + $0x158] sm:$0xff] }
 0x2b7   :  { %2242 = vmatpush3.bf16.msra.mxu1 %v2241_v63  ;;  %v1426_v63 = vld [vmem:[%s3259_s7 + $0xd0] sm:$0xff] }
 0x2b8   :  { %2243 = vmatprep.subr.bf16.mxu1 %v2423_v0  ;;  %v2268_v2 = vpack.c.bf16 %v1427_v1, %v1426_v63  ;;  %v1465_v63 = vld [vmem:[%s3261_s6 + $0x160] sm:$0xff]  ;;  %v1466_v1 = vld [vmem:[%s3261_s6 + $0x168] sm:$0xff] }
 0x2bb   :  { %2245 = vmatpush3.bf16.msra.mxu1 %v2244_v3  ;;  %v1428_v3 = vld [vmem:[%s3259_s7 + $0xe0] sm:$0xff] }
 0x2bc   :  { %2246 = vmatprep.subr.bf16.mxu1 %v2423_v0  ;;  %v2271_v6 = vpack.c.bf16 %v1429_v5, %v1428_v3  ;;  %v1467_v3 = vld [vmem:[%s3261_s6 + $0x170] sm:$0xff]  ;;  %v1468_v5 = vld [vmem:[%s3261_s6 + $0x178] sm:$0xff] }
 0x2bf   :  { %2248 = vmatpush3.bf16.msra.mxu1 %v2247_v7  ;;  %v1430_v7 = vld [vmem:[%s3259_s7 + $0xf0] sm:$0xff] }
 0x2c0   :  { %2249 = vmatprep.subr.bf16.mxu1 %v2423_v0 }
 0x2c3   :  { %2251 = vmatpush3.bf16.msra.mxu1 %v2250_v12  ;;  %v1434_v12 = vld [vmem:[%s3256_s4 + $0x100] sm:$0xff] }
 0x2c4   :  { %2276 = vmatprep.subr.bf16.mxu1 %v2423_v0 }
 0x2c5   :  { %v475_v8 = vpop.f32.mrb[4].mxu0 }
 0x2c6   :  { %v1841_v9 = vpop.f32.mrb[5].mxu0 }
 0x379   :  { %v405_v13 = vpop.f32.mrb[2].mxu1 }
 0x37a   :  { %v476_v15 = vadd.f32 %v475_v8, %v405_v13  ;;  %v1806_v16 = vpop.f32.mrb[3].mxu1  ;;  %v1431_v8 = vld [vmem:[%s3259_s7 + $0xf8] sm:$0xff]  ;;  %v1435_v13 = vld [vmem:[%s3256_s4 + $0x108] sm:$0xff] }
 0x37b   :  { %v2274_v9 = vpack.c.bf16 %v1431_v8, %v1430_v7  ;;  %v1437_v16 = vld [vmem:[%s3256_s4 + $0x118] sm:$0xff]  ;;  %v1451_v7 = vld [vmem:[%s3260_s5 + $0x2] ss:$0 sm:$0xff] }
 0x37c   :  { %v486_v19 = vadd.f32 %v1380_v14, %v476_v15  ;;  %v2301_v14 = vpack.c.bf16 %v1435_v13, %v1434_v12  ;;  %v1436_v15 = vld [vmem:[%s3256_s4 + $0x110] sm:$0xff]  ;;  %v1469_v8 = vld [vmem:[%s3259_s7 + $0x100] sm:$0xff] }
 0x37e   :  { %v487_v21 = vmax.f32 %v486_v19, 0.0  ;;  %v2304_v19 = vpack.c.bf16 %v1437_v16, %v1436_v15  ;;  %v1472_v15 = vld [vmem:[%s3259_s7 + $0x118] sm:$0xff] }
 0x380   :  { %1875 = vmatmul.mubr.f32.vlgmr.msra.gmra.mrb[4].mxu1 %v487_v21 }
 0x381   :  { %2278 = vmatpush3.bf16.msra.mxu1 %v2277_v20  ;;  %1949 = vmatprep.mubr.msk.f32.mxu1 %vm2424_vm0, %v2425_v4  ;;  %v1438_v20 = vld [vmem:[%s3256_s4 + $0x120] sm:$0xff] }
 0x382   :  { %2279 = vmatprep.subr.bf16.mxu1 %v2423_v0 }
 0x385   :  { %2281 = vmatpush3.bf16.msra.mxu1 %v2280_v25  ;;  %v1441_v25 = vld [vmem:[%s3256_s4 + $0x138] sm:$0xff] }
 0x386   :  { %2282 = vmatprep.subr.bf16.mxu1 %v2423_v0  ;;  %v2310_v26 = vpack.c.bf16 %v1441_v25, %v1440_v23  ;;  %v1478_v23 = vld [vmem:[%s3259_s7 + $0x148] sm:$0xff] }
 0x389   :  { %2284 = vmatpush3.bf16.msra.mxu1 %v2283_v28  ;;  %v1443_v28 = vld [vmem:[%s3256_s4 + $0x148] sm:$0xff] }
 0x38a   :  { %2285 = vmatprep.subr.bf16.mxu1 %v2423_v0  ;;  %v2313_v29 = vpack.c.bf16 %v1443_v28, %v1442_v27  ;;  %v1480_v27 = vld [vmem:[%s3259_s7 + $0x158] sm:$0xff] }
 0x38d   :  { %2287 = vmatpush3.bf16.msra.mxu1 %v2286_v31  ;;  %v1445_v31 = vld [vmem:[%s3256_s4 + $0x158] sm:$0xff] }
 0x38e   :  { %2288 = vmatprep.subr.bf16.mxu1 %v2423_v0  ;;  %v2316_v32 = vpack.c.bf16 %v1445_v31, %v1444_v30  ;;  %v1482_v30 = vld [vmem:[%s3259_s7 + $0x168] sm:$0xff] }
 0x391   :  { %2290 = vmatpush3.bf16.msra.mxu1 %v2289_v34  ;;  %v1447_v34 = vld [vmem:[%s3256_s4 + $0x168] sm:$0xff] }
 0x392   :  { %2291 = vmatprep.subr.bf16.mxu1 %v2423_v0  ;;  %v2319_v35 = vpack.c.bf16 %v1447_v34, %v1446_v33  ;;  %v1484_v33 = vld [vmem:[%s3259_s7 + $0x178] sm:$0xff] }
 0x395   :  { %2293 = vmatpush3.bf16.msra.mxu1 %v2292_v37  ;;  %v1449_v37 = vld [vmem:[%s3256_s4 + $0x178] sm:$0xff] }
 0x396   :  { %2294 = vmatprep.subr.bf16.mxu1 %v2423_v0  ;;  %v2322_v38 = vpack.c.bf16 %v1449_v37, %v1448_v36  ;;  %v1197_v37 = vld [vmem:[%s3264_s9] sm:$0xff] }
 0x399   :  { %2296 = vmatpush3.bf16.msra.mxu1 %v2295_v40  ;;  %v1433_v40 = vld [vmem:[%s3263_s8 + $0x1] ss:$0 sm:$0xff] }
 0x39a   :  { %2297 = vmatprep.subr.bf16.mxu1 %v2423_v0 }
 0x39d   :  { %2299 = vmatpush3.bf16.msra.mxu1 %v2298_v43  ;;  %v1453_v43 = vld [vmem:[%s3261_s6 + $0x100] sm:$0xff] }
 0x39e   :  { %1987 = vmatprep.subr.mxu1 %v2425_v4 }
 0x3a0   :  { %1950 = vmatmul.mubr.f32.vlgmr.msra.gmra.mrb[6].mxu1 %v487_v21  ;;  %v1439_v21 = vld [vmem:[%s3256_s4 + $0x128] sm:$0xff] }
 0x3a1   :  { %1989 = vmatprep.mubr.msk.f32.mxu1 %vm2424_vm0, %v2425_v4  ;;  %v2307_v22 = vpack.c.bf16 %v1439_v21, %v1438_v20  ;;  %v1476_v20 = vld [vmem:[%s3259_s7 + $0x138] sm:$0xff] }
 0x453   :  { %v579_v47 = vpop.f32.mrb[4].mxu1 }
 0x454   :  { %v580_v48 = vadd.f32 %v1398_v44, %v579_v47  ;;  %v1876_v49 = vpop.f32.mrb[5].mxu1  ;;  %v1454_v44 = vld [vmem:[%s3261_s6 + $0x108] sm:$0xff] }
 0x455   :  { %v2349_v46 = vpack.c.bf16 %v1454_v44, %v1453_v43  ;;  %v1456_v49 = vld [vmem:[%s3261_s6 + $0x118] sm:$0xff] }
 0x456   :  { %1878 = vmatpush3.msra.mxu0 %v580_v48  ;;  %v1455_v48 = vld [vmem:[%s3261_s6 + $0x110] sm:$0xff] }
 0x457   :  { %1880 = vmatmul.mubr.msk.f32.vlgmr.msra.gmra.mrb[6].mxu0 %vm233_vm1, %v2697_v24  ;;  %2252 = vmatprep.subr.bf16.mxu0 %v2423_v0 }
 0x458   :  { %2254 = vmatpush3.bf16.msra.mxu0 %v2253_v50  ;;  %1914 = vmatprep.mubr.msk.f32.mxu0 %vm2424_vm0, %v2425_v4  ;;  %v2352_v50 = vpack.c.bf16 %v1456_v49, %v1455_v48  ;;  %v1204_v48 = vld [vmem:[%s3264_s9 + $0x38] sm:$0xff] }
 0x459   :  { %2255 = vmatprep.subr.bf16.mxu0 %v2423_v0 }
 0x45c   :  { %2257 = vmatpush3.bf16.msra.mxu0 %v2256_v53  ;;  %v2355_v53 = vpack.c.bf16 %v1458_v52, %v1457_v51  ;;  %v1206_v51 = vld [vmem:[%s3264_s9 + $0x48] sm:$0xff] }
 0x45d   :  { %2258 = vmatprep.subr.bf16.mxu0 %v2423_v0 }
 0x460   :  { %2260 = vmatpush3.bf16.msra.mxu0 %v2259_v56  ;;  %v2358_v56 = vpack.c.bf16 %v1460_v55, %v1459_v54  ;;  %v1208_v54 = vld [vmem:[%s3264_s9 + $0x58] sm:$0xff] }
 0x461   :  { %2261 = vmatprep.subr.bf16.mxu0 %v2423_v0 }
 0x464   :  { %2263 = vmatpush3.bf16.msra.mxu0 %v2262_v59  ;;  %v2361_v59 = vpack.c.bf16 %v1462_v58, %v1461_v57  ;;  %v1210_v57 = vld [vmem:[%s3264_s9 + $0x68] sm:$0xff] }
 0x465   :  { %2264 = vmatprep.subr.bf16.mxu0 %v2423_v0 }
 0x468   :  { %2266 = vmatpush3.bf16.msra.mxu0 %v2265_v62  ;;  %v2364_v62 = vpack.c.bf16 %v1464_v61, %v1463_v60  ;;  %v1212_v60 = vld [vmem:[%s3264_s9 + $0x78] sm:$0xff] }
 0x469   :  { %2267 = vmatprep.subr.bf16.mxu0 %v2423_v0 }
 0x46c   :  { %2269 = vmatpush3.bf16.msra.mxu0 %v2268_v2  ;;  %v2367_v2 = vpack.c.bf16 %v1466_v1, %v1465_v63  ;;  %v1286_v63 = vld [vmem:[%s3265_s11 + $0x8] sm:$0xff]  ;;  %v1287_v1 = vld [vmem:[%s3265_s11 + $0x10] sm:$0xff] }
 0x46d   :  { %2270 = vmatprep.subr.bf16.mxu0 %v2423_v0 }
 0x470   :  { %2272 = vmatpush3.bf16.msra.mxu0 %v2271_v6  ;;  %v2370_v6 = vpack.c.bf16 %v1468_v5, %v1467_v3  ;;  %v1288_v3 = vld [vmem:[%s3265_s11 + $0x18] sm:$0xff] }
 0x471   :  { %2273 = vmatprep.subr.bf16.mxu0 %v2423_v0  ;;  %v2400_v5 = vpack.c.bf16 %v1288_v3, %v1287_v1 }
 0x473   :  { %v823_v10 = vpop.f32.mrb[6].mxu1 }
 0x474   :  { %v1951_v11 = vpop.f32.mrb[7].mxu1  ;;  %2275 = vmatpush3.bf16.msra.mxu0 %v2274_v9  ;;  %v1470_v9 = vld [vmem:[%s3259_s7 + $0x108] sm:$0xff] }
 0x475   :  { %2300 = vmatprep.subr.bf16.mxu0 %v2423_v0  ;;  %v2325_v13 = vpack.c.bf16 %v1470_v9, %v1469_v8  ;;  %v1291_v9 = vld [vmem:[%s3265_s11 + $0x30] sm:$0xff] }
 0x52a   :  { %v649_v17 = vpop.f32.mrb[6].mxu0 }
 0x52b   :  { %v1881_v18 = vpop.f32.mrb[7].mxu0  ;;  %1915 = vmatmul.mubr.f32.vlgmr.msra.gmra.mrb[8].mxu0 %v649_v17  ;;  %v1473_v17 = vld [vmem:[%s3259_s7 + $0x120] sm:$0xff] }
 0x52c   :  { %2302 = vmatpush3.bf16.msra.mxu0 %v2301_v14  ;;  %1984 = vmatprep.mubr.msk.f32.mxu0 %vm2424_vm0, %v2425_v4  ;;  %v1471_v14 = vld [vmem:[%s3259_s7 + $0x110] sm:$0xff]  ;;  %v1474_v18 = vld [vmem:[%s3259_s7 + $0x128] sm:$0xff] }
 0x52d   :  { %2303 = vmatprep.subr.bf16.mxu0 %v2423_v0  ;;  %v2328_v16 = vpack.c.bf16 %v1472_v15, %v1471_v14  ;;  %v1295_v15 = vld [vmem:[%s3265_s11 + $0x50] sm:$0xff] }
 0x530   :  { %2305 = vmatpush3.bf16.msra.mxu0 %v2304_v19  ;;  %v2331_v19 = vpack.c.bf16 %v1474_v18, %v1473_v17  ;;  %v1297_v18 = vld [vmem:[%s3265_s11 + $0x60] sm:$0xff] }
 0x531   :  { %2306 = vmatprep.subr.bf16.mxu0 %v2423_v0 }
 0x534   :  { %2308 = vmatpush3.bf16.msra.mxu0 %v2307_v22  ;;  %v1477_v22 = vld [vmem:[%s3259_s7 + $0x140] sm:$0xff] }
 0x535   :  { %2309 = vmatprep.subr.bf16.mxu0 %v2423_v0  ;;  %v2337_v25 = vpack.c.bf16 %v1478_v23, %v1477_v22 }
 0x538   :  { %2311 = vmatpush3.bf16.msra.mxu0 %v2310_v26  ;;  %v1479_v26 = vld [vmem:[%s3259_s7 + $0x150] sm:$0xff] }
 0x539   :  { %2312 = vmatprep.subr.bf16.mxu0 %v2423_v0  ;;  %v2340_v28 = vpack.c.bf16 %v1480_v27, %v1479_v26 }
 0x53c   :  { %2314 = vmatpush3.bf16.msra.mxu0 %v2313_v29  ;;  %v1481_v29 = vld [vmem:[%s3259_s7 + $0x160] sm:$0xff] }
 0x53d   :  { %2315 = vmatprep.subr.bf16.mxu0 %v2423_v0  ;;  %v2343_v31 = vpack.c.bf16 %v1482_v30, %v1481_v29 }
 0x540   :  { %2317 = vmatpush3.bf16.msra.mxu0 %v2316_v32  ;;  %v1483_v32 = vld [vmem:[%s3259_s7 + $0x170] sm:$0xff] }
 0x541   :  { %2318 = vmatprep.subr.bf16.mxu0 %v2423_v0  ;;  %v2346_v34 = vpack.c.bf16 %v1484_v33, %v1483_v32 }
 0x544   :  { %2320 = vmatpush3.bf16.msra.mxu0 %v2319_v35 }
 0x545   :  { %2321 = vmatprep.subr.bf16.mxu0 %v2423_v0 }
 0x548   :  { %2323 = vmatpush3.bf16.msra.mxu0 %v2322_v38  ;;  %v1198_v38 = vld [vmem:[%s3264_s9 + $0x8] sm:$0xff] }
 0x549   :  { %2348 = vmatprep.subr.bf16.mxu0 %v2423_v0 }
 0x5fe   :  { %v753_v39 = vpop.f32.mrb[8].mxu0 }
 0x5ff   :  { %v824_v41 = vadd.f32 %v823_v10, %v753_v39  ;;  %v1916_v42 = vpop.f32.mrb[9].mxu0  ;;  %v2373_v39 = vpack.c.bf16 %v1198_v38, %v1197_v37 }
 0x601   :  { %v835_v45 = vadd.f32 %v1433_v40, %v824_v41  ;;  %v1199_v40 = vld [vmem:[%s3264_s9 + $0x10] sm:$0xff]  ;;  %v1200_v41 = vld [vmem:[%s3264_s9 + $0x18] sm:$0xff] }
 0x602   :  { %v2376_v44 = vpack.c.bf16 %v1200_v41, %v1199_v40  ;;  %v1301_v41 = vld [vmem:[%s3267_s12] sm:$0x1] }
 0x603   :  { %v836_v47 = vmax.f32 %v835_v45, 0.0  ;;  %v1201_v45 = vld [vmem:[%s3264_s9 + $0x20] sm:$0xff] }
 0x605   :  { %1985 = vmatmul.mubr.f32.vlgmr.msra.gmra.mrb[10].mxu0 %v836_v47 }
 0x606   :  { %2350 = vmatpush3.bf16.msra.mxu0 %v2349_v46  ;;  %2059 = vmatprep.mubr.msk.f32.mxu0 %vm2424_vm0, %v2425_v4  ;;  %v1202_v46 = vld [vmem:[%s3264_s9 + $0x28] sm:$0xff] }
 0x607   :  { %2351 = vmatprep.subr.bf16.mxu0 %v2423_v0 }
 0x60a   :  { %2353 = vmatpush3.bf16.msra.mxu0 %v2352_v50  ;;  %v1205_v50 = vld [vmem:[%s3264_s9 + $0x40] sm:$0xff] }
 0x60b   :  { %2354 = vmatprep.subr.bf16.mxu0 %v2423_v0  ;;  %v2385_v52 = vpack.c.bf16 %v1206_v51, %v1205_v50 }
 0x60e   :  { %2356 = vmatpush3.bf16.msra.mxu0 %v2355_v53  ;;  %v1207_v53 = vld [vmem:[%s3264_s9 + $0x50] sm:$0xff] }
 0x60f   :  { %2357 = vmatprep.subr.bf16.mxu0 %v2423_v0  ;;  %v2388_v55 = vpack.c.bf16 %v1208_v54, %v1207_v53 }
 0x612   :  { %2359 = vmatpush3.bf16.msra.mxu0 %v2358_v56  ;;  %v1209_v56 = vld [vmem:[%s3264_s9 + $0x60] sm:$0xff] }
 0x613   :  { %2360 = vmatprep.subr.bf16.mxu0 %v2423_v0  ;;  %v2391_v58 = vpack.c.bf16 %v1210_v57, %v1209_v56 }
 0x616   :  { %2362 = vmatpush3.bf16.msra.mxu0 %v2361_v59  ;;  %v1211_v59 = vld [vmem:[%s3264_s9 + $0x70] sm:$0xff] }
 0x617   :  { %2363 = vmatprep.subr.bf16.mxu0 %v2423_v0  ;;  %v2394_v61 = vpack.c.bf16 %v1212_v60, %v1211_v59 }
 0x61a   :  { %2365 = vmatpush3.bf16.msra.mxu0 %v2364_v62  ;;  %v1285_v62 = vld [vmem:[%s3265_s11] sm:$0xff] }
 0x61b   :  { %2366 = vmatprep.subr.bf16.mxu0 %v2423_v0 }
 0x61e   :  { %2368 = vmatpush3.bf16.msra.mxu0 %v2367_v2  ;;  %v2397_v2 = vpack.c.bf16 %v1286_v63, %v1285_v62 }
 0x61f   :  { %2369 = vmatprep.subr.bf16.mxu0 %v2423_v0 }
 0x622   :  { %2371 = vmatpush3.bf16.msra.mxu0 %v2370_v6  ;;  %v1289_v6 = vld [vmem:[%s3265_s11 + $0x20] sm:$0xff] }
 0x623   :  { %2396 = vmatprep.subr.bf16.mxu0 %v2423_v0 }
 0x625   :  { %2060 = vmatmul.mubr.f32.vlgmr.msra.gmra.mrb[12].mxu0 %v836_v47  ;;  %v2379_v47 = vpack.c.bf16 %v1202_v46, %v1201_v45 }
 0x626   :  { %2129 = vmatprep.mubr.msk.f32.mxu0 %vm2424_vm0, %v2425_v4  ;;  %2398 = vmatpush3.bf16.msra.mxu0 %v2397_v2 }
 0x627   :  { %2399 = vmatprep.subr.bf16.mxu0 %v2423_v0 }
 0x62a   :  { %2401 = vmatpush3.bf16.msra.mxu0 %v2400_v5 }
 0x62b   :  { %2402 = vmatprep.subr.bf16.mxu0 %v2423_v0 }
 0x6d8   :  { %v928_v10 = vpop.f32.mrb[10].mxu0 }
 0x6d9   :  { %v929_v11 = vadd.f32 %v1451_v7, %v928_v10  ;;  %v1986_v12 = vpop.f32.mrb[11].mxu0  ;;  %v1290_v7 = vld [vmem:[%s3265_s11 + $0x28] sm:$0xff]  ;;  %v1292_v10 = vld [vmem:[%s3265_s11 + $0x38] sm:$0xff] }
 0x6da   :  { %v2403_v8 = vpack.c.bf16 %v1290_v7, %v1289_v6  ;;  %v1293_v12 = vld [vmem:[%s3265_s11 + $0x40] sm:$0xff] }
 0x6db   :  { %1988 = vmatpush3.msra.mxu1 %v929_v11  ;;  %v2406_v11 = vpack.c.bf16 %v1292_v10, %v1291_v9 }
 0x6dc   :  { %1990 = vmatmul.mubr.msk.f32.vlgmr.msra.gmra.mrb[8].mxu1 %vm233_vm1, %v2697_v24  ;;  %2324 = vmatprep.subr.bf16.mxu1 %v2423_v0  ;;  %v1475_v24 = vld [vmem:[%s3259_s7 + $0x130] sm:$0xff] }
 0x6dd   :  { %2326 = vmatpush3.bf16.msra.mxu1 %v2325_v13  ;;  %2024 = vmatprep.mubr.msk.f32.mxu1 %vm2424_vm0, %v2425_v4  ;;  %v2334_v21 = vpack.c.bf16 %v1476_v20, %v1475_v24  ;;  %v1294_v13 = vld [vmem:[%s3265_s11 + $0x48] sm:$0xff] }
 0x6de   :  { %2327 = vmatprep.subr.bf16.mxu1 %v2423_v0  ;;  %2404 = vmatpush3.bf16.msra.mxu0 %v2403_v8  ;;  %v2409_v14 = vpack.c.bf16 %v1294_v13, %v1293_v12 }
 0x6df   :  { %2405 = vmatprep.subr.bf16.mxu0 %v2423_v0 }
 0x6e1   :  { %2329 = vmatpush3.bf16.msra.mxu1 %v2328_v16  ;;  %v1296_v16 = vld [vmem:[%s3265_s11 + $0x58] sm:$0xff] }
 0x6e2   :  { %2330 = vmatprep.subr.bf16.mxu1 %v2423_v0  ;;  %2407 = vmatpush3.bf16.msra.mxu0 %v2406_v11  ;;  %v2412_v17 = vpack.c.bf16 %v1296_v16, %v1295_v15 }
 0x6e3   :  { %2408 = vmatprep.subr.bf16.mxu0 %v2423_v0 }
 0x6e5   :  { %2332 = vmatpush3.bf16.msra.mxu1 %v2331_v19  ;;  %v1298_v19 = vld [vmem:[%s3265_s11 + $0x68] sm:$0xff] }
 0x6e6   :  { %2333 = vmatprep.subr.bf16.mxu1 %v2423_v0  ;;  %2410 = vmatpush3.bf16.msra.mxu0 %v2409_v14  ;;  %v2415_v24 = vpack.c.bf16 %v1298_v19, %v1297_v18 }
 0x6e7   :  { %2411 = vmatprep.subr.bf16.mxu0 %v2423_v0 }
 0x6e9   :  { %2335 = vmatpush3.bf16.msra.mxu1 %v2334_v21  ;;  %v1486_v21 = vld [vmem:[%s3263_s8 + $0x2] ss:$0 sm:$0xff] }
 0x6ea   :  { %2336 = vmatprep.subr.bf16.mxu1 %v2423_v0  ;;  %2413 = vmatpush3.bf16.msra.mxu0 %v2412_v17 }
 0x6eb   :  { %2414 = vmatprep.subr.bf16.mxu0 %v2423_v0 }
 0x6ed   :  { %2338 = vmatpush3.bf16.msra.mxu1 %v2337_v25 }
 0x6ee   :  { %2339 = vmatprep.subr.bf16.mxu1 %v2423_v0  ;;  %2416 = vmatpush3.bf16.msra.mxu0 %v2415_v24 }
 0x6ef   :  { %2417 = vmatprep.subr.bf16.mxu0 %v2423_v0 }
 0x6f1   :  { %2341 = vmatpush3.bf16.msra.mxu1 %v2340_v28 }
 0x6f2   :  { %2342 = vmatprep.subr.bf16.mxu1 %v2423_v0 }
 0x6f5   :  { %2344 = vmatpush3.bf16.msra.mxu1 %v2343_v31 }
 0x6f6   :  { %2345 = vmatprep.subr.bf16.mxu1 %v2423_v0 }
 0x6f8   :  { %v3127_v35 = vpop.f32.mrb[12].mxu0 }
 0x6f9   :  { %v2061_v36 = vpop.f32.mrb[13].mxu0  ;;  %2347 = vmatpush3.bf16.msra.mxu1 %v2346_v34  ;;  %v1300_v34 = vld [vmem:[%s3265_s11 + $0x78] sm:$0xff] }
 0x6fa   :  { %2372 = vmatprep.subr.bf16.mxu1 %v2423_v0  ;;  %v1213_v36 = vld [vmem:[%s3266_s10] sm:$0x1] }
 0x7af   :  { %v998_v42 = vpop.f32.mrb[8].mxu1 }
 0x7b0   :  { %2025 = vmatmul.mubr.f32.vlgmr.msra.gmra.mrb[10].mxu1 %v998_v42  ;;  %v1991_v43 = vpop.f32.mrb[9].mxu1 }
 0x7b1   :  { %2374 = vmatpush3.bf16.msra.mxu1 %v2373_v39  ;;  %2094 = vmatprep.mubr.msk.f32.mxu1 %vm2424_vm0, %v2425_v4  ;;  %v1203_v4 = vld [vmem:[%s3264_s9 + $0x30] sm:$0xff] }
 0x7b2   :  { %2375 = vmatprep.subr.bf16.mxu1 %v2423_v0  ;;  %v2382_v49 = vpack.c.bf16 %v1204_v48, %v1203_v4 }
 0x7b5   :  { %2377 = vmatpush3.bf16.msra.mxu1 %v2376_v44 }
 0x7b6   :  { %2378 = vmatprep.subr.bf16.mxu1 %v2423_v0 }
 0x7b9   :  { %2380 = vmatpush3.bf16.msra.mxu1 %v2379_v47 }
 0x7ba   :  { %2381 = vmatprep.subr.bf16.mxu1 %v2423_v0 }
 0x7bd   :  { %2383 = vmatpush3.bf16.msra.mxu1 %v2382_v49 }
 0x7be   :  { %2384 = vmatprep.subr.bf16.mxu1 %v2423_v0 }
 0x7c1   :  { %2386 = vmatpush3.bf16.msra.mxu1 %v2385_v52 }
 0x7c2   :  { %2387 = vmatprep.subr.bf16.mxu1 %v2423_v0 }
 0x7c5   :  { %2389 = vmatpush3.bf16.msra.mxu1 %v2388_v55 }
 0x7c6   :  { %2390 = vmatprep.subr.bf16.mxu1 %v2423_v0 }
 0x7c9   :  { %2392 = vmatpush3.bf16.msra.mxu1 %v2391_v58 }
 0x7ca   :  { %2393 = vmatprep.subr.bf16.mxu1 %v2423_v0  ;;  %v1299_v0 = vld [vmem:[%s3265_s11 + $0x70] sm:$0xff] }
 0x7cd   :  { %2395 = vmatpush3.bf16.msra.mxu1 %v2394_v61 }
 0x883   :  { %v1102_v20 = vpop.f32.mrb[10].mxu1 }
 0x884   :  { %v1173_v22 = vadd.f32 %v3127_v35, %v1102_v20  ;;  %v2026_v23 = vpop.f32.mrb[11].mxu1  ;;  %v2418_v35 = vpack.c.bf16 %v1300_v34, %v1299_v0 }
 0x886   :  { %v1184_v25 = vadd.f32 %v1486_v21, %v1173_v22  ;;  %2419 = vmatpush3.bf16.msra.mxu0 %v2418_v35 }
 0x888   :  { %v1185_v26 = vmax.f32 %v1184_v25, 0.0 }
 0x88a   :  { %v1190_v27 = vrot.slane %v1185_v26, 4 }
 0x88c   :  { %v1191_v28 = vadd.f32 %v1190_v27, %v1185_v26 }
 0x88e   :  { %v1192_v29 = vrot.slane %v1191_v28, 2 }
 0x890   :  { %v1193_v30 = vadd.f32 %v1192_v29, %v1191_v28 }
 0x892   :  { %v1194_v31 = vrot.slane %v1193_v30, 1 }
 0x894   :  { %v1195_v32 = vadd.f32 %v1194_v31, %v1193_v30 }
 0x896   :  { %v1196_v33 = vmul.f32 0.125, %v1195_v32 }
 0x898   :  { %2095 = vmatmul.mubr.f32.vlgmr.msra.gmra.mrb[12].mxu1 %v1196_v33 }
 0x96b   :  { %v1280_v37 = vpop.f32.mrb[12].mxu1 }
 0x96c   :  { %v1281_v38 = vadd.f32 %v1280_v37, %v1213_v36  ;;  %v2096_v39 = vpop.f32.mrb[13].mxu1 }
 0x96e   :  { %v1284_v40 = vmax.f32 %v1281_v38, 0.0 }
 0x970   :  { %2130 = vmatmul.mubr.f32.vlgmr.msra.gmra.mrb[14].mxu0 %v1284_v40 }
 0xa43   :  { %v1368_v42 = vpop.f32.mrb[14].mxu0 }
 0xa44   :  { %v1369_v43 = vadd.f32 %v1368_v42, %v1301_v41  ;;  %v2131_v44 = vpop.f32.mrb[15].mxu0 }
 0xa46   :  { %1372 = vst [vmem:[%s3268_s13] sm:$0x1] %v1369_v43 }

</bundles_post_ra>
